<compile_context>
chip_gen: v7x
topology: tpu7x:2x2x1
jax: 0.10.0
libtpu: 0.0.40
codegen_flags: <defaults>
</compile_context>

<pallas_src>
import functools

import jax
import jax.numpy as jnp
from jax.experimental import pallas as pl
from jax.experimental.pallas import tpu as pltpu


def _round_up(x, m):
    return ((x + m - 1) // m) * m


def _tpu_vmem_capacity():
    try:
        return int(pltpu.get_tpu_info().vmem_capacity_bytes)
    except Exception:
        return 64 * 1024 * 1024  # conservative (v7x-sized per-core VMEM)


def _vmem_limit_bytes():
    """Generation-aware scoped-VMEM limit (headroom below physical capacity)."""
    cap = _tpu_vmem_capacity()
    if cap >= 128 * 1024 * 1024:
        return 96 * 1024 * 1024                        # v5e / v6e (128 MiB parts)
    return max(16 * 1024 * 1024, int(cap * 0.72))      # v7x-like: ~46 MiB of 64 MiB


def _num_tensorcores_hint():
    # Heuristic: 64-MiB-per-core VMEM parts (v7x) have 2 TensorCores per chip.
    return 2 if _tpu_vmem_capacity() <= 64 * 1024 * 1024 else 1


# ---------------------------------------------------------------------------
# Kernels
# ---------------------------------------------------------------------------

def _fused_ca_kernel(x_ref, w1t_ref, b1_ref, w2_ref, b2_ref, o_ref, *, inv_hw):
    """Single pass for one batch element: pool + squeeze-excite + scale.

    x_ref / o_ref: (C, HW) in the input dtype (batch dim squeezed); HW need not be
    a multiple of 128 since the block equals the full array dims.
    """
    # AdaptiveAvgPool2d(1): f32 accumulation only.  Read x_ref at each use site
    # (no long-lived full-slab SSA value -> no extra VMEM slab).
    mean = jnp.sum(x_ref[...], axis=-1, keepdims=True, dtype=jnp.float32) * inv_hw
    # 1x1 conv C -> Cr (+ bias, ReLU) as broadcast-mul + sublane reduce (no MXU).
    h = jnp.sum(mean * w1t_ref[...], axis=0, keepdims=True) + b1_ref[...]     # (1, Cr)
    h = jnp.maximum(h, 0.0)
    # 1x1 conv Cr -> C (+ bias, Sigmoid) as broadcast-mul + lane reduce.
    s = jax.nn.sigmoid(
        jnp.sum(w2_ref[...] * h, axis=-1, keepdims=True) + b2_ref[...])       # (C, 1)
    # Scale in the native dtype.
    o_ref[...] = x_ref[...] * s.astype(o_ref.dtype)


def _pool_se_kernel(x_ref, w1t_ref, b1_ref, w2_ref, b2_ref, s_ref, *,
                    inv_hw, tile, hw, need_mask):
    """Tiled pooling + squeeze-excite.

    Grid = (N, n_tiles); the (C, 1) f32 output block is constant along the tile
    axis, so it stays VMEM-resident and is used directly as the accumulator.
    The ragged spatial tail (hw % tile != 0) is masked in-kernel: the overhanging
    part of the last input block is undefined, never zero.
    """
    t = pl.program_id(1)

    @pl.when(t == 0)
    def _():
        s_ref[...] = jnp.zeros_like(s_ref)

    x = x_ref[...]                                                    # (C, tile)
    if need_mask:
        lane = jax.lax.broadcasted_iota(jnp.int32, (1, tile), 1)
        x = jnp.where(t * tile + lane < hw, x, 0)
    s_ref[...] += jnp.sum(x, axis=-1, keepdims=True, dtype=jnp.float32)

    @pl.when(t == pl.num_programs(1) - 1)
    def _():
        mean = s_ref[...] * inv_hw                                    # (C, 1)
        h = jnp.maximum(
            jnp.sum(mean * w1t_ref[...], axis=0, keepdims=True) + b1_ref[...], 0.0)
        s_ref[...] = jax.nn.sigmoid(
            jnp.sum(w2_ref[...] * h, axis=-1, keepdims=True) + b2_ref[...])   # (C, 1)


def _scale_kernel(x_ref, s_ref, o_ref):
    """x * s for one lane-dense (C, tile) block; multiply in the input dtype.

    The overhanging part of the last output block is discarded by the pipeline,
    so no tail masking is needed here.
    """
    o_ref[...] = x_ref[...] * s_ref[...].astype(o_ref.dtype)


# ---------------------------------------------------------------------------
# pallas_call wrappers
# ---------------------------------------------------------------------------

def _ca_fused(x3, w1t, b1r, w2, b2, *, vmem_limit):
    N, C, HW = x3.shape
    Cr = w1t.shape[1]
    itemsize = jnp.dtype(x3.dtype).itemsize
    kernel = functools.partial(_fused_ca_kernel, inv_hw=1.0 / float(HW))
    cost = pl.CostEstimate(
        flops=int(3 * N * C * HW),
        transcendentals=int(N * C),
        bytes_accessed=int(2 * N * C * HW * itemsize))
    return pl.pallas_call(
        kernel,
        out_shape=jax.ShapeDtypeStruct((N, C, HW), x3.dtype),
        grid_spec=pltpu.PrefetchScalarGridSpec(
            num_scalar_prefetch=0,
            grid=(N,),
            in_specs=[
                pl.BlockSpec((pl.Squeezed(), C, HW), lambda n: (n, 0, 0)),
                pl.BlockSpec((C, Cr), lambda n: (0, 0)),
                pl.BlockSpec((1, Cr), lambda n: (0, 0)),
                pl.BlockSpec((C, Cr), lambda n: (0, 0)),
                pl.BlockSpec((C, 1), lambda n: (0, 0)),
            ],
            out_specs=pl.BlockSpec((pl.Squeezed(), C, HW), lambda n: (n, 0, 0)),
        ),
        compiler_params=pltpu.CompilerParams(
            dimension_semantics=("parallel",),
            vmem_limit_bytes=vmem_limit),
        cost_estimate=cost,
    )(x3, w1t, b1r, w2, b2)


def _ca_tiled(x3, w1t, b1r, w2, b2, *, tile, vmem_limit):
    N, C, HW = x3.shape
    Cr = w1t.shape[1]
    itemsize = jnp.dtype(x3.dtype).itemsize
    n_tiles = -(-HW // tile)
    need_mask = (HW % tile) != 0

    # Pass 1: pooled mean + squeeze-excite -> (N, C, 1) f32 sigmoid scale.
    pool_kernel = functools.partial(
        _pool_se_kernel, inv_hw=1.0 / float(HW), tile=tile, hw=HW,
        need_mask=need_mask)
    pool_cost = pl.CostEstimate(
        flops=int(N * C * HW),
        transcendentals=int(N * C),
        bytes_accessed=int(N * C * HW * itemsize + N * C * 4))
    s = pl.pallas_call(
        pool_kernel,
        out_shape=jax.ShapeDtypeStruct((N, C, 1), jnp.float32),
        grid_spec=pltpu.PrefetchScalarGridSpec(
            num_scalar_prefetch=0,
            grid=(N, n_tiles),
            in_specs=[
                pl.BlockSpec((pl.Squeezed(), C, tile), lambda n, t: (n, 0, t)),
                pl.BlockSpec((C, Cr), lambda n, t: (0, 0)),
                pl.BlockSpec((1, Cr), lambda n, t: (0, 0)),
                pl.BlockSpec((C, Cr), lambda n, t: (0, 0)),
                pl.BlockSpec((C, 1), lambda n, t: (0, 0)),
            ],
            out_specs=pl.BlockSpec((pl.Squeezed(), C, 1), lambda n, t: (n, 0, 0)),
        ),
        compiler_params=pltpu.CompilerParams(
            dimension_semantics=("parallel", "arbitrary"),
            vmem_limit_bytes=vmem_limit),
        cost_estimate=pool_cost,
    )(x3, w1t, b1r, w2, b2)

    # Pass 2: lane-dense scale, fully parallel (shards over both TCs on v7x).
    scale_cost = pl.CostEstimate(
        flops=int(N * C * HW),
        transcendentals=0,
        bytes_accessed=int(2 * N * C * HW * itemsize + N * C * 4))
    return pl.pallas_call(
        _scale_kernel,
        out_shape=jax.ShapeDtypeStruct((N, C, HW), x3.dtype),
        grid_spec=pltpu.PrefetchScalarGridSpec(
            num_scalar_prefetch=0,
            grid=(N, n_tiles),
            in_specs=[
                pl.BlockSpec((pl.Squeezed(), C, tile), lambda n, t: (n, 0, t)),
                pl.BlockSpec((pl.Squeezed(), C, 1), lambda n, t: (n, 0, 0)),
            ],
            out_specs=pl.BlockSpec((pl.Squeezed(), C, tile), lambda n, t: (n, 0, t)),
        ),
        compiler_params=pltpu.CompilerParams(
            dimension_semantics=("parallel", "parallel"),
            vmem_limit_bytes=vmem_limit),
        cost_estimate=scale_cost,
    )(x3, s)


def ca_layer(x_nchw, w1, b1, w2, b2, *, force_tiled=False, tile_override=None):
    """Channel attention: x * sigmoid(W2 relu(W1 avgpool(x) + b1) + b2).

    x_nchw: (N, C, H, W); w1: (Cr, C); b1: (Cr, 1); w2: (C, Cr); b2: (C, 1).
    tile_override (if given) must be a multiple of 128.
    """
    N, C, H, W = x_nchw.shape
    Cr = w1.shape[0]
    HW = H * W
    itemsize = jnp.dtype(x_nchw.dtype).itemsize

    vmem_limit = _vmem_limit_bytes()
    budget = int(vmem_limit * 0.85)   # weights/scratch are tiny -> loose headroom

    # Small f32 weights, laid out so both 1x1 convs are broadcast-mul + reduce.
    w1t = w1.T.astype(jnp.float32)                 # (C, Cr)
    b1r = b1.reshape(1, Cr).astype(jnp.float32)    # (1, Cr)
    w2f = w2.astype(jnp.float32)                   # (C, Cr)
    b2f = b2.reshape(C, 1).astype(jnp.float32)     # (C, 1)

    x3 = x_nchw.reshape(N, C, HW)                  # free row-major view, no pad

    # Physical VMEM footprint of one (C, HW) slab (sublane/lane tile rounding).
    sub = max(8, 32 // itemsize)
    slab = _round_up(C, sub) * _round_up(HW, 128) * itemsize
    fused_vmem = 4 * slab                          # 2x(in) + 2x(out) buffers

    # Tiled-path lane-tile size: ~2 MiB per buffer, under budget with 4 buffers,
    # multiple of 128 lanes.  A single full-width block is used when HW is small.
    if tile_override is not None:
        tile = int(tile_override)
    else:
        target = 2 * 1024 * 1024
        tile = min(target // (C * itemsize), budget // (4 * C * itemsize))
        tile = max(128, (tile // 128) * 128)
    if tile >= HW:
        tile = HW                                  # full-dim block (always legal)
    n_tiles = -(-HW // tile)

    # On 2-TensorCore parts (v7x) a single-image fused grid leaves one core idle;
    # prefer the tiled path whose scale pass is fully "parallel" over lane tiles.
    # TODO(synk): additionally split the pool pass's tile axis into a 2-way
    # "parallel" partial-sum dim for the remaining 1/3 of HBM traffic on v7x.
    prefer_tiled_for_cores = (
        _num_tensorcores_hint() >= 2 and N < 2 and n_tiles >= 2)

    use_fused = ((not force_tiled)
                 and fused_vmem <= budget
                 and not prefer_tiled_for_cores)

    if use_fused:
        out = _ca_fused(x3, w1t, b1r, w2f, b2f, vmem_limit=vmem_limit)
    else:
        out = _ca_tiled(x3, w1t, b1r, w2f, b2f, tile=tile, vmem_limit=vmem_limit)
    return out.reshape(N, C, H, W)


def reference_ca_layer(x, w1, b1, w2, b2):
    # Pure-JAX reference mirroring the PyTorch forward.
    y = jnp.mean(x.astype(jnp.float32), axis=(2, 3))                     # (N, C)
    z = jnp.maximum(y @ w1.T.astype(jnp.float32) + b1[:, 0], 0.0)        # (N, Cr)
    s = jax.nn.sigmoid(z @ w2.T.astype(jnp.float32) + b2[:, 0])          # (N, C)
    return x * s[:, :, None, None].astype(x.dtype)


if __name__ == "__main__":
    N, C, reduction = 2, 32, 16
    Cr = C // reduction

    key = jax.random.PRNGKey(0)
    kx, k1, k2, k3, k4 = jax.random.split(key, 5)

    w1 = jax.random.normal(k1, (Cr, C), dtype=jnp.float32) * (1.0 / jnp.sqrt(C))
    b1 = jax.random.normal(k2, (Cr, 1), dtype=jnp.float32) * 0.1
    w2 = jax.random.normal(k3, (C, Cr), dtype=jnp.float32) * (1.0 / jnp.sqrt(Cr))
    b2 = jax.random.normal(k4, (C, 1), dtype=jnp.float32) * 0.1

    fn = jax.jit(ca_layer, static_argnames=("force_tiled", "tile_override"))

    configs = [
        # (shape, dtype, force_tiled, tile_override, tol)
        ((N, C, 16, 16), jnp.float32, False, None, 1e-5),  # fused, lane-dense HW
        ((N, C, 16, 16), jnp.float32, True, None, 1e-5),   # tiled, single tile
        ((N, C, 12, 12), jnp.float32, False, None, 1e-5),  # fused, ragged HW=144
        ((N, C, 12, 12), jnp.float32, True, 128, 1e-5),    # tiled, masked tail tile
        ((N, C, 16, 16), jnp.bfloat16, True, 128, 5e-2),   # tiled bf16, 2 tiles
    ]
    for shape, dt, force_tiled, tile_override, tol in configs:
        x = jax.random.normal(kx, shape, dtype=jnp.float32).astype(dt)
        out = jax.block_until_ready(
            fn(x, w1, b1, w2, b2, force_tiled=force_tiled,
               tile_override=tile_override))
        ref = reference_ca_layer(x, w1, b1, w2, b2)
        assert out.shape == shape and out.dtype == dt
        assert jnp.allclose(out.astype(jnp.float32), ref.astype(jnp.float32),
                            atol=tol, rtol=tol), (
            "mismatch vs reference", shape, dt, force_tiled, tile_override)

    print("KERNEL_OK")
</pallas_src>

<mosaic_0001>
module attributes {stable_mosaic.version = 11 : i64} {
  func.func @_fused_ca_kernel(%arg0: i32, %arg1: memref<1x32x256xf32, #tpu.memory_space<vmem>>, %arg2: memref<32x2xf32, #tpu.memory_space<vmem>>, %arg3: memref<1x2xf32, #tpu.memory_space<vmem>>, %arg4: memref<32x2xf32, #tpu.memory_space<vmem>>, %arg5: memref<32x1xf32, #tpu.memory_space<vmem>>, %arg6: memref<1x32x256xf32, #tpu.memory_space<vmem>>) attributes {dimension_semantics = [#tpu.dimension_semantics<parallel>], iteration_bounds = array<i64: 2>, scalar_prefetch = 0 : i64, scratch_operands = 0 : i64, tpu.core_type = #tpu.core_type<tc>, window_params = [{transform_indices = @transform_0, window_bounds = array<i64: 1, 32, 256>}, {pipeline_mode = #tpu.pipeline_mode<synchronous>, transform_indices = @transform_1, window_bounds = array<i64: 32, 2>}, {pipeline_mode = #tpu.pipeline_mode<synchronous>, transform_indices = @transform_2, window_bounds = array<i64: 1, 2>}, {pipeline_mode = #tpu.pipeline_mode<synchronous>, transform_indices = @transform_3, window_bounds = array<i64: 32, 2>}, {pipeline_mode = #tpu.pipeline_mode<synchronous>, transform_indices = @transform_4, window_bounds = array<i64: 32, 1>}, {transform_indices = @transform_5, window_bounds = array<i64: 1, 32, 256>}]} {
    %c0 = arith.constant 0 : index
    %c0_0 = arith.constant 0 : index
    %c0_1 = arith.constant 0 : index
    %0 = vector.load %arg1[%c0, %c0_0, %c0_1] : memref<1x32x256xf32, #tpu.memory_space<vmem>>, vector<1x32x256xf32>
    %1 = vector.shape_cast %0 : vector<1x32x256xf32> to vector<32x256xf32>
    %cst = arith.constant dense<0.000000e+00> : vector<32xf32>
    %2 = vector.multi_reduction <add>, %1, %cst [1] : vector<32x256xf32> to vector<32xf32>
    %3 = vector.shape_cast %2 : vector<32xf32> to vector<32x1xf32>
    %cst_2 = arith.constant 3.906250e-03 : f32
    %4 = vector.broadcast %cst_2 : f32 to vector<32x1xf32>
    %5 = arith.mulf %3, %4 : vector<32x1xf32>
    %c0_3 = arith.constant 0 : index
    %c0_4 = arith.constant 0 : index
    %6 = vector.load %arg2[%c0_3, %c0_4] : memref<32x2xf32, #tpu.memory_space<vmem>>, vector<32x2xf32>
    %7 = vector.broadcast %5 : vector<32x1xf32> to vector<32x2xf32>
    %8 = arith.mulf %7, %6 : vector<32x2xf32>
    %cst_5 = arith.constant dense<0.000000e+00> : vector<2xf32>
    %9 = vector.multi_reduction <add>, %8, %cst_5 [0] : vector<32x2xf32> to vector<2xf32>
    %10 = vector.shape_cast %9 : vector<2xf32> to vector<1x2xf32>
    %c0_6 = arith.constant 0 : index
    %c0_7 = arith.constant 0 : index
    %11 = vector.load %arg3[%c0_6, %c0_7] : memref<1x2xf32, #tpu.memory_space<vmem>>, vector<1x2xf32>
    %12 = arith.addf %10, %11 : vector<1x2xf32>
    %cst_8 = arith.constant 0.000000e+00 : f32
    %13 = vector.broadcast %cst_8 : f32 to vector<1x2xf32>
    %14 = arith.maximumf %12, %13 : vector<1x2xf32>
    %c0_9 = arith.constant 0 : index
    %c0_10 = arith.constant 0 : index
    %15 = vector.load %arg4[%c0_9, %c0_10] : memref<32x2xf32, #tpu.memory_space<vmem>>, vector<32x2xf32>
    %16 = vector.broadcast %14 : vector<1x2xf32> to vector<32x2xf32>
    %17 = arith.mulf %15, %16 : vector<32x2xf32>
    %cst_11 = arith.constant dense<0.000000e+00> : vector<32xf32>
    %18 = vector.multi_reduction <add>, %17, %cst_11 [1] : vector<32x2xf32> to vector<32xf32>
    %19 = vector.shape_cast %18 : vector<32xf32> to vector<32x1xf32>
    %c0_12 = arith.constant 0 : index
    %c0_13 = arith.constant 0 : index
    %20 = vector.load %arg5[%c0_12, %c0_13] : memref<32x1xf32, #tpu.memory_space<vmem>>, vector<32x1xf32>
    %21 = arith.addf %19, %20 : vector<32x1xf32>
    %22 = arith.negf %21 : vector<32x1xf32>
    %23 = math.exp %22 : vector<32x1xf32>
    %cst_14 = arith.constant 1.000000e+00 : f32
    %24 = vector.broadcast %cst_14 : f32 to vector<32x1xf32>
    %25 = arith.addf %24, %23 : vector<32x1xf32>
    %26 = arith.divf %24, %25 : vector<32x1xf32>
    %c0_15 = arith.constant 0 : index
    %c0_16 = arith.constant 0 : index
    %c0_17 = arith.constant 0 : index
    %27 = vector.load %arg1[%c0_15, %c0_16, %c0_17] : memref<1x32x256xf32, #tpu.memory_space<vmem>>, vector<1x32x256xf32>
    %28 = vector.shape_cast %27 : vector<1x32x256xf32> to vector<32x256xf32>
    %29 = vector.broadcast %26 : vector<32x1xf32> to vector<32x256xf32>
    %30 = arith.mulf %28, %29 : vector<32x256xf32>
    %c0_18 = arith.constant 0 : index
    %c0_19 = arith.constant 0 : index
    %c0_20 = arith.constant 0 : index
    %31 = vector.load %arg6[%c0_18, %c0_19, %c0_20] : memref<1x32x256xf32, #tpu.memory_space<vmem>>, vector<1x32x256xf32>
    %32 = vector.shape_cast %31 : vector<1x32x256xf32> to vector<32x256xf32>
    %33 = vector.shape_cast %30 : vector<32x256xf32> to vector<1x32x256xf32>
    tpu.vector_store %arg6[%c0_18, %c0_19, %c0_20], %33 {strides = array<i32>} : memref<1x32x256xf32, #tpu.memory_space<vmem>>, vector<1x32x256xf32>,
    return
  }
  func.func @transform_0(%arg0: i32) -> (i32, i32, i32) {
    %c0_i32 = arith.constant 0 : i32
    %c0_i32_0 = arith.constant 0 : i32
    %c0_i32_1 = arith.constant 0 : i32
    return %arg0, %c0_i32, %c0_i32_0 : i32, i32, i32
  }
  func.func @transform_1(%arg0: i32) -> (i32, i32) {
    %c0_i32 = arith.constant 0 : i32
    %c0_i32_0 = arith.constant 0 : i32
    %c0_i32_1 = arith.constant 0 : i32
    return %c0_i32, %c0_i32_0 : i32, i32
  }
  func.func @transform_2(%arg0: i32) -> (i32, i32) {
    %c0_i32 = arith.constant 0 : i32
    %c0_i32_0 = arith.constant 0 : i32
    %c0_i32_1 = arith.constant 0 : i32
    return %c0_i32, %c0_i32_0 : i32, i32
  }
  func.func @transform_3(%arg0: i32) -> (i32, i32) {
    %c0_i32 = arith.constant 0 : i32
    %c0_i32_0 = arith.constant 0 : i32
    %c0_i32_1 = arith.constant 0 : i32
    return %c0_i32, %c0_i32_0 : i32, i32
  }
  func.func @transform_4(%arg0: i32) -> (i32, i32) {
    %c0_i32 = arith.constant 0 : i32
    %c0_i32_0 = arith.constant 0 : i32
    %c0_i32_1 = arith.constant 0 : i32
    return %c0_i32, %c0_i32_0 : i32, i32
  }
  func.func @transform_5(%arg0: i32) -> (i32, i32, i32) {
    %c0_i32 = arith.constant 0 : i32
    %c0_i32_0 = arith.constant 0 : i32
    %c0_i32_1 = arith.constant 0 : i32
    return %arg0, %c0_i32, %c0_i32_0 : i32, i32, i32
  }
}

</mosaic_0001>

<bundles_post_ra>
// kernel: ca_layer.1
= control target key start
LH: loop header
LB: loop body
LE: loop exit
PB: predicated region body
PF: predicated region fallthrough
CT: control target
= control target key end

     0   :  { %s504_s18 = smov 0   ;;  %s607_s0 = inlined_call_operand.vmem [shape: f32[2,32,256], index: 0, kind: input, shape index: {}]   ;;  %s608_s1 = inlined_call_operand.vmem [shape: f32[32,2], index: 1, kind: input, shape index: {}]   ;;  %s609_s2 = inlined_call_operand.vmem [shape: f32[1,2], index: 2, kind: input, shape index: {}]   ;;  %s610_s3 = inlined_call_operand.vmem [shape: f32[32,2], index: 3, kind: input, shape index: {}]   ;;  %s611_s4 = inlined_call_operand.vmem [shape: f32[32,1], index: 4, kind: input, shape index: {}]   ;;  %s612_s5 = inlined_call_operand.vmem [shape: f32[2,32,256], index: 5, kind: output, shape index: {}]  }
   0x1 LB: > { %s421_s19 = sadd.s32 4294967295, %s471_s18   ;;  %p425_p0 = scmp.ge.s32.totalorder %s471_s18, 1  ;;  %s471_s18 = sphi %s504_s18, %s15_s18  }
   0x2   : > { %p187_p1 = scmp.lt.s32.totalorder %s471_s18, 3 }
   0x4   : > { %p188_p2 = pnand %p425_p0, %p187_p1 }
   0x5   : > { %p215_p3 = scmp.lt.s32.totalorder (!%p188_p2), %s421_s19, 1  ;;  %v249_v15 = vld [vmem:[%s608_s1] sm:$0xff] (!%p188_p2)  ;;  %v251_v17 = vld [vmem:[%s608_s1 + $0x10] sm:$0xff] (!%p188_p2)  ;;  %v250_v18 = vld [vmem:[%s608_s1 + $0x8] sm:$0xff] (!%p188_p2)  ;;  %vm257_vm0 = vcmask (!%p188_p2), 15360   ;;  %v278_v38 = vlaneseq (!%p188_p2)  ;;  %v473_v60 = vmov (!%p188_p2), 0  }
   0x6   : > { %191 = sbr.rel (%p188_p2) target bundleno = 507 (0x1fb), region = 40  ;;  %v252_v22 = vld [vmem:[%s608_s1 + $0x18] sm:$0xff] (!%p188_p2)  ;;  %v271_v42 = vld [vmem:[%s609_s2] sm:$0x1] (!%p188_p2)  ;;  %v275_v47 = vld [vmem:[%s610_s3 + $0x8] sm:$0xff] (!%p188_p2)  ;;  %448 = vset.pattern.permute.xlu1 (!%p188_p2), %v473_v60  ;;  %447 = vset.pattern.permute.xlu0 (!%p188_p2), %v473_v60 }
   0x7   : > { %v279_v41 = vshrl.u32 (!%p188_p2), %v278_v38, 7  ;;  %v274_v48 = vld [vmem:[%s610_s3] sm:$0xff] (!%p188_p2)  ;;  %v277_v50 = vld [vmem:[%s610_s3 + $0x18] sm:$0xff] (!%p188_p2)  ;;  %v276_v51 = vld [vmem:[%s610_s3 + $0x10] sm:$0xff] (!%p188_p2) }
   0x8   : > { %v299_v61 = vld [vmem:[%s611_s4 + $0x8] sm:$0xff] (!%p188_p2)  ;;  %v298_v62 = vld [vmem:[%s611_s4] sm:$0xff] (!%p188_p2) }
   0x9   : > { %v280_v45 = vsub.s32 (!%p188_p2), 0, %v279_v41 }
   0xd   : > { %s614_s19 = smov (!%p215_p3, %s421_s19), 1 }
   0xe   : > { %s436_s20 = sshll.u32 %s614_s19, 6 }
   0xf   : > { %s219_s23 = scalar_lea.vmem %s607_s0, %s436_s20  ;;  %s224_s30 = scalar_lea.vmem %s612_s5, %s436_s20 }
  0x10   : > { %v520_v0 = vld [vmem:[%s219_s23] sm:$0xff]  ;;  %v522_v1 = vld [vmem:[%s219_s23 + $0x8] sm:$0xff]  ;;  %v530_v5 = vld [vmem:[%s219_s23 + $0x10] sm:$0xff] }
  0x11   : > { %v524_v2 = vld [vmem:[%s219_s23 + $0x20] sm:$0xff]  ;;  %v233_v3 = vadd.f32 %v522_v1, %v520_v0  ;;  %v528_v4 = vld [vmem:[%s219_s23 + $0x28] sm:$0xff]  ;;  %v532_v6 = vld [vmem:[%s219_s23 + $0x18] sm:$0xff] }
  0x12   : > { %v239_v7 = vadd.f32 %v528_v4, %v524_v2  ;;  %v536_v8 = vld [vmem:[%s219_s23 + $0x30] sm:$0xff]  ;;  %v538_v9 = vld [vmem:[%s219_s23 + $0x38] sm:$0xff]  ;;  %v236_v10 = vadd.f32 %v532_v6, %v530_v5 }
  0x13   : > { %234 = vadd.xlane.f32.xlu0 %v233_v3  ;;  %v242_v11 = vadd.f32 %v538_v9, %v536_v8 }
  0x14   : > { %240 = vadd.xlane.f32.xlu1 %v239_v7 }
  0x17   : > { %237 = vadd.xlane.f32.xlu0 %v236_v10 }
  0x18   : > { %243 = vadd.xlane.f32.xlu1 %v242_v11  ;;  %v301_v11 = vld [vmem:[%s611_s4 + $0x18] sm:$0xff] }
  0xa0   : > { %v235_v12 = vpop.xlane.xlu0 %234 }
  0xa1   : > { %v245_v13 = vmul.f32 0.00390625, %v235_v12  ;;  %v241_v14 = vpop.xlane.xlu1 %240  ;;  %v300_v12 = vld [vmem:[%s611_s4 + $0x10] sm:$0xff] }
  0xa2   : > { %v247_v16 = vmul.f32 0.00390625, %v241_v14 }
  0xa3   : > { %v253_v20 = vmul.f32 %v249_v15, %v245_v13 }
  0xa4   : > { %v238_v19 = vpop.xlane.xlu0 %237  ;;  %v255_v25 = vmul.f32 %v251_v17, %v247_v16 }
  0xa5   : > { %v246_v21 = vmul.f32 0.00390625, %v238_v19  ;;  %v244_v23 = vpop.xlane.xlu1 %243  ;;  %v258_v28 = vsel %vm257_vm0, %v253_v20, 0.0 }
  0xa6   : > { %v248_v24 = vmul.f32 0.00390625, %v244_v23  ;;  %v261_v31 = vsel %vm257_vm0, %v255_v25, 0.0 }
  0xa7   : > { %v254_v26 = vmul.f32 %v250_v18, %v246_v21 }
  0xa8   : > { %v256_v27 = vmul.f32 %v252_v22, %v248_v24 }
  0xa9   : > { %v259_v29 = vsel %vm257_vm0, %v254_v26, 0.0 }
  0xaa   : > { %v260_v30 = vadd.f32 %v259_v29, %v258_v28  ;;  %v263_v32 = vsel %vm257_vm0, %v256_v27, 0.0 }
  0xac   : > { %v262_v33 = vadd.f32 %v261_v31, %v260_v30 }
  0xae   : > { %v264_v34 = vadd.f32 %v263_v32, %v262_v33 }
  0xb0   : > { %v265_v35 = vrot.slane %v264_v34, 4 }
  0xb2   : > { %v266_v36 = vadd.f32 %v265_v35, %v264_v34 }
  0xb4   : > { %v267_v37 = vrot.slane %v266_v36, 2 }
  0xb6   : > { %v268_v39 = vadd.f32 %v267_v37, %v266_v36 }
  0xb8   : > { %v269_v40 = vrot.slane %v268_v39, 1 }
  0xba   : > { %v270_v43 = vadd.f32 %v269_v40, %v268_v39 }
  0xbc   : > { %v272_v44 = vadd.f32 %v271_v42, %v270_v43 }
  0xbe   : > { %v273_v46 = vmax.f32 %v272_v44, 0.0 }
  0xc0   : > { %v281_v49 = vrot.slane %v273_v46, %v280_v45 }
  0xc2   : > { %v283_v52 = vmul.f32 %v281_v49, %v275_v47  ;;  %v282_v53 = vmul.f32 %v281_v49, %v274_v48  ;;  %v285_v56 = vmul.f32 %v281_v49, %v277_v50  ;;  %v284_v57 = vmul.f32 %v281_v49, %v276_v51 }
  0xc4   : > { %v289_v54 = vsel %vm257_vm0, %v283_v52, 0.0  ;;  %v286_v55 = vsel %vm257_vm0, %v282_v53, 0.0  ;;  %v295_v58 = vsel %vm257_vm0, %v285_v56, 0.0  ;;  %v292_v59 = vsel %vm257_vm0, %v284_v57, 0.0 }
  0xc5   : > { %290 = vadd.xlane.f32.xlu1 %v289_v54  ;;  %287 = vadd.xlane.f32.xlu0 %v286_v55 }
  0xc9   : > { %296 = vadd.xlane.f32.xlu1 %v295_v58  ;;  %293 = vadd.xlane.f32.xlu0 %v292_v59 }
 0x152   : > { %v291_v63 = vpop.xlane.xlu1 %290  ;;  %v288_v3 = vpop.xlane.xlu0 %287 }
 0x153   : > { %v303_v7 = vadd.f32 %v299_v61, %v291_v63  ;;  %v302_v10 = vadd.f32 %v298_v62, %v288_v3 }
 0x155   : > { %v431_v13 = vmul.f32 -1.442695, %v303_v7  ;;  %v430_v14 = vmul.f32 -1.442695, %v302_v10 }
 0x156   : > { %v297_v15 = vpop.xlane.xlu1 %296  ;;  %v294_v16 = vpop.xlane.xlu0 %293 }
 0x157   : > { %449 = vpow2.f32 %v431_v13  ;;  %v305_v17 = vadd.f32 %v301_v11, %v297_v15  ;;  %v304_v18 = vadd.f32 %v300_v12, %v294_v16 }
 0x158   : > { %451 = vpow2.f32 %v430_v14 }
 0x159   : > { %v433_v19 = vmul.f32 -1.442695, %v305_v17  ;;  %v432_v20 = vmul.f32 -1.442695, %v304_v18 }
 0x15b   : > { %453 = vpow2.f32 %v433_v19 }
 0x15c   : > { %455 = vpow2.f32 %v432_v20 }
 0x161   : > { %v450_v21 = vpop.eup %449 }
 0x162   : > { %v452_v22 = vpop.eup %451  ;;  %v319_v23 = vadd.f32 1.0, %v450_v21 }
 0x163   : > { %v318_v24 = vadd.f32 1.0, %v452_v22 }
 0x164   : > { %457 = vrcp.f32 %v319_v23 }
 0x165   : > { %v454_v25 = vpop.eup %453  ;;  %459 = vrcp.f32 %v318_v24 }
 0x166   : > { %v456_v26 = vpop.eup %455  ;;  %v321_v28 = vadd.f32 1.0, %v454_v25 }
 0x167   : > { %v320_v27 = vadd.f32 1.0, %v456_v26 }
 0x169   : > { %461 = vrcp.f32 %v320_v27 }
 0x16a   : > { %463 = vrcp.f32 %v321_v28 }
 0x16e   : > { %v458_v29 = vpop.eup %457 }
 0x16f   : > { %v460_v30 = vpop.eup %459  ;;  %337 = vperm.xlu1 %448, %v458_v29  }
 0x170   : > { %332 = vperm.xlu0 %447, %v460_v30  }
 0x173   : > { %v462_v31 = vpop.eup %461 }
 0x174   : > { %342 = vperm.xlu1 %448, %v462_v31   ;;  %v464_v32 = vpop.eup %463 }
 0x178   : > { %347 = vperm.xlu1 %448, %v464_v32  }
 0x1ee   : > { %v338_v33 = vpop.permute.xlu1 %337 }
 0x1ef   : > { %v352_v34 = vmul.f32 %v338_v33, %v530_v5  ;;  %v353_v35 = vmul.f32 %v338_v33, %v532_v6  ;;  %v333_v36 = vpop.permute.xlu0 %332 }
 0x1f0   : > { %v350_v37 = vmul.f32 %v333_v36, %v520_v0  ;;  %v351_v38 = vmul.f32 %v333_v36, %v522_v1 }
 0x1f1   : > { %360 = vst [vmem:[%s224_s30 + $0x10] sm:$0xff] %v352_v34  ;;  %361 = vst [vmem:[%s224_s30 + $0x18] sm:$0xff] %v353_v35 }
 0x1f2   : > { %358 = vst [vmem:[%s224_s30] sm:$0xff] %v350_v37  ;;  %359 = vst [vmem:[%s224_s30 + $0x8] sm:$0xff] %v351_v38 }
 0x1f3   : > { %v343_v39 = vpop.permute.xlu1 %342 }
 0x1f4   : > { %v354_v40 = vmul.f32 %v343_v39, %v524_v2  ;;  %v355_v41 = vmul.f32 %v343_v39, %v528_v4 }
 0x1f6   : > { %362 = vst [vmem:[%s224_s30 + $0x20] sm:$0xff] %v354_v40  ;;  %363 = vst [vmem:[%s224_s30 + $0x28] sm:$0xff] %v355_v41 }
 0x1f7   : > { %v348_v42 = vpop.permute.xlu1 %347 }
 0x1f8   : > { %v356_v5 = vmul.f32 %v348_v42, %v536_v8  ;;  %v357_v6 = vmul.f32 %v348_v42, %v538_v9 }
 0x1fa   : > { %364 = vst [vmem:[%s224_s30 + $0x30] sm:$0xff] %v356_v5  ;;  %365 = vst [vmem:[%s224_s30 + $0x38] sm:$0xff] %v357_v6 }
 0x1fb PF: > { %s15_s18 = sadd.s32 1, %s471_s18  }
 0x1fc   : > { %p12_p4 = scmp.ge.s32.totalorder %s15_s18, 4  }
 0x1fe   :  { %14 = sbr.rel (!%p12_p4) target bundleno = 1 (0x1), region = 70 }

</bundles_post_ra>
